<compile_context>
chip_gen: v7x
topology: tpu7x:2x2x1
jax: 0.10.0
libtpu: 0.0.40
codegen_flags: <defaults>
</compile_context>

<pallas_src>
import jax
import jax.numpy as jnp
from jax.experimental import pallas as pl
from jax.experimental.pallas import tpu as pltpu


def _unflatten_kernel(x_ref, o_ref):
    # x_ref: (tile_n, h*w)  flat feature block
    # o_ref: (tile_n, h, w) unflattened block
    h, w = o_ref.shape[1], o_ref.shape[2]
    # Row-major split of the flat feature axis.  Static unrolled loop over the
    # (small) channel count; each iteration is a dense (tile_n, w) copy using
    # only basic slicing (always supported by Mosaic).
    for j in range(h):
        o_ref[:, j, :] = x_ref[:, j * w:(j + 1) * w]


def _choose_tile_n(n, feat, itemsize, vmem_budget_bytes=12 * 1024 * 1024):
    """Largest batch tile whose double-buffered in+out blocks fit the budget.

    Footprint ~= 4 * tile_n * feat * itemsize (2 pipeline buffers for the
    input block + 2 for the output block).  12 MiB keeps us under the default
    scoped-VMEM limit on every TPU generation (v5e: 16 MiB, v6e: 32 MiB,
    v7x: 32 MiB scoped / 64 MiB physical) while still issuing multi-MiB DMAs.
    """
    per_row = 4 * feat * itemsize
    t = max(1, vmem_budget_bytes // per_row)
    if t >= n:
        return n                      # single block covers the whole batch
    if t >= 8:
        t = (t // 8) * 8              # sublane-align the batch block dim
    return int(t)


def unflatten(x, size):
    """Pallas equivalent of Unflatten(size).forward(x).

    :param x: (n_batches, h*w) array
    :param size: tuple (h, w) == (channels, length)
    :returns: (n_batches, h, w) array
    """
    h, w = size
    n, feat = x.shape
    assert feat == h * w, "flat feature dim must equal h*w"

    tile_n = _choose_tile_n(n, feat, jnp.dtype(x.dtype).itemsize)
    grid = (pl.cdiv(n, tile_n),)

    return pl.pallas_call(
        _unflatten_kernel,
        out_shape=jax.ShapeDtypeStruct((n, h, w), x.dtype),
        grid=grid,
        in_specs=[
            # block i covers batch rows [i*tile_n, (i+1)*tile_n), full flat dim
            pl.BlockSpec((tile_n, feat), lambda i: (i, 0)),
        ],
        # full (h, w) output block per batch tile: lane/sublane-dense writeback
        out_specs=pl.BlockSpec((tile_n, h, w), lambda i: (i, 0, 0)),
        compiler_params=pltpu.CompilerParams(
            # independent batch tiles -> shard across v7x's two TensorCores
            dimension_semantics=("parallel",),
        ),
    )(x)


if __name__ == "__main__":
    # Small shapes consistent with the module: size = (channels, length)
    N, C, L = 8, 4, 128

    key = jax.random.PRNGKey(0)
    x = jax.random.normal(key, (N, C * L), dtype=jnp.float32)

    out = jax.block_until_ready(unflatten(x, (C, L)))

    # Reference: torch's x.view(N, C, L) == row-major reshape.
    expected = x.reshape(N, C, L)
    assert out.shape == (N, C, L), out.shape
    assert out.dtype == x.dtype
    assert jnp.array_equal(out, expected), "mismatch vs. reference reshape"

    print("KERNEL_OK")
</pallas_src>

<mosaic_0001>
module attributes {stable_mosaic.version = 11 : i64} {
  func.func @_unflatten_kernel(%arg0: i32, %arg1: memref<8x512xf32, #tpu.memory_space<vmem>>, %arg2: memref<8x4x128xf32, #tpu.memory_space<vmem>>) attributes {dimension_semantics = [#tpu.dimension_semantics<parallel>], iteration_bounds = array<i64: 1>, scalar_prefetch = 0 : i64, scratch_operands = 0 : i64, tpu.core_type = #tpu.core_type<tc>, window_params = [{transform_indices = @transform_0, window_bounds = array<i64: 8, 512>}, {transform_indices = @transform_1, window_bounds = array<i64: 8, 4, 128>}]} {
    %c0 = arith.constant 0 : index
    %c0_0 = arith.constant 0 : index
    %0 = vector.load %arg1[%c0, %c0_0] : memref<8x512xf32, #tpu.memory_space<vmem>>, vector<8x128xf32>
    %c0_1 = arith.constant 0 : index
    %c0_2 = arith.constant 0 : index
    %c0_3 = arith.constant 0 : index
    %1 = vector.load %arg2[%c0_1, %c0_2, %c0_3] : memref<8x4x128xf32, #tpu.memory_space<vmem>>, vector<8x1x128xf32>
    %2 = vector.shape_cast %1 : vector<8x1x128xf32> to vector<8x128xf32>
    %3 = vector.shape_cast %0 : vector<8x128xf32> to vector<8x1x128xf32>
    tpu.vector_store %arg2[%c0_1, %c0_2, %c0_3], %3 {strides = array<i32>} : memref<8x4x128xf32, #tpu.memory_space<vmem>>, vector<8x1x128xf32>,
    %c0_4 = arith.constant 0 : index
    %c128 = arith.constant 128 : index
    %4 = vector.load %arg1[%c0_4, %c128] : memref<8x512xf32, #tpu.memory_space<vmem>>, vector<8x128xf32>
    %c0_5 = arith.constant 0 : index
    %c1 = arith.constant 1 : index
    %c0_6 = arith.constant 0 : index
    %5 = vector.load %arg2[%c0_5, %c1, %c0_6] : memref<8x4x128xf32, #tpu.memory_space<vmem>>, vector<8x1x128xf32>
    %6 = vector.shape_cast %5 : vector<8x1x128xf32> to vector<8x128xf32>
    %7 = vector.shape_cast %4 : vector<8x128xf32> to vector<8x1x128xf32>
    tpu.vector_store %arg2[%c0_5, %c1, %c0_6], %7 {strides = array<i32>} : memref<8x4x128xf32, #tpu.memory_space<vmem>>, vector<8x1x128xf32>,
    %c0_7 = arith.constant 0 : index
    %c256 = arith.constant 256 : index
    %8 = vector.load %arg1[%c0_7, %c256] : memref<8x512xf32, #tpu.memory_space<vmem>>, vector<8x128xf32>
    %c0_8 = arith.constant 0 : index
    %c2 = arith.constant 2 : index
    %c0_9 = arith.constant 0 : index
    %9 = vector.load %arg2[%c0_8, %c2, %c0_9] : memref<8x4x128xf32, #tpu.memory_space<vmem>>, vector<8x1x128xf32>
    %10 = vector.shape_cast %9 : vector<8x1x128xf32> to vector<8x128xf32>
    %11 = vector.shape_cast %8 : vector<8x128xf32> to vector<8x1x128xf32>
    tpu.vector_store %arg2[%c0_8, %c2, %c0_9], %11 {strides = array<i32>} : memref<8x4x128xf32, #tpu.memory_space<vmem>>, vector<8x1x128xf32>,
    %c0_10 = arith.constant 0 : index
    %c384 = arith.constant 384 : index
    %12 = vector.load %arg1[%c0_10, %c384] : memref<8x512xf32, #tpu.memory_space<vmem>>, vector<8x128xf32>
    %c0_11 = arith.constant 0 : index
    %c3 = arith.constant 3 : index
    %c0_12 = arith.constant 0 : index
    %13 = vector.load %arg2[%c0_11, %c3, %c0_12] : memref<8x4x128xf32, #tpu.memory_space<vmem>>, vector<8x1x128xf32>
    %14 = vector.shape_cast %13 : vector<8x1x128xf32> to vector<8x128xf32>
    %15 = vector.shape_cast %12 : vector<8x128xf32> to vector<8x1x128xf32>
    tpu.vector_store %arg2[%c0_11, %c3, %c0_12], %15 {strides = array<i32>} : memref<8x4x128xf32, #tpu.memory_space<vmem>>, vector<8x1x128xf32>,
    return
  }
  func.func @transform_0(%arg0: i32) -> (i32, i32) {
    %c0_i32 = arith.constant 0 : i32
    %c0_i32_0 = arith.constant 0 : i32
    return %arg0, %c0_i32 : i32, i32
  }
  func.func @transform_1(%arg0: i32) -> (i32, i32, i32) {
    %c0_i32 = arith.constant 0 : i32
    %c0_i32_0 = arith.constant 0 : i32
    %c0_i32_1 = arith.constant 0 : i32
    return %arg0, %c0_i32, %c0_i32_0 : i32, i32, i32
  }
}

</mosaic_0001>

<bundles_post_ra>
// kernel: tpu_custom_call.1
= control target key start
LH: loop header
LB: loop body
LE: loop exit
PB: predicated region body
PF: predicated region fallthrough
CT: control target
= control target key end

     0   :  { %6 = vsyncpa [#allocation3], 0  ;;  %s440_s0 = inlined_call_operand.hbm [shape: f32[8,512], index: 0, kind: input, shape index: {}]   ;;  %s441_s1 = inlined_call_operand.hbm [shape: f32[8,4,128], index: 1, kind: output, shape index: {}]  }
   0x1   :  { %7 = vsyncpa [#allocation4], 0  ;;  %s375_s6 = smov [#allocation2]   ;;  %s327_s10 = scalar_lea.hbm %s440_s0, 512 }
   0x2   :  { %s14_s7 = sshll.u32 %s375_s6, 4  ;;  %p328_p0 = scmp.ne.s32.totalorder %s440_s0, %s327_s10  ;;  %s15_s7 = int_to_ptr.vmem [resolvable:$true] %s14_s7 }
   0x3   :  { %p331_p1 = scmp.lt.u32.totalorder %s327_s10, %s440_s0 }
   0x5   :  { %p333_p2 = pnand %p331_p1, %p328_p0 }
   0x7   :  { %336 = shalt.err (!%p333_p2)
}
   0x8   :  { %s337_s15 = scalar_lea.vmem %s15_s7, 512  ;;  %p342_p4 = scmp.lt.s32.totalorder %s15_s7, %s15_s7 }
   0x9   :  { %p338_p3 = scmp.ne.s32.totalorder %s15_s7, %s337_s15  ;;  %p343_p5 = scmp.lt.s32.totalorder %s337_s15, %s337_s15 }
   0xb   :  { %p344_p6 = por %p343_p5, %p342_p4 }
   0xd   :  { %p345_p7 = pnand %p344_p6, %p338_p3 }
   0xf   :  { %348 = shalt.err (!%p345_p7)
}
  0x10   :  { %17 = dma.hbm_to_vmem [thread:$0]  %s440_s0, 512, %s15_s7, [#allocation3]  }
  0x11   :  { %371 = dma.done.wait [#allocation3], 512  }
  0x12   :  { %372 = vsyncadd [#allocation3], 4294966784  ;;  %v27_v0 = vlaneseq  ;;  %v376_v1 = vmov 1966171168   ;;  %v21_v6 = vld [vmem:[#allocation2] sm:$0xff]  ;;  %v88_v7 = vld [vmem:[#allocation2 + $0x8] sm:$0xff] }
  0x13   :  { %v25_v2 = vunpack.c.l.s4 %v376_v1  ;;  %v155_v8 = vld [vmem:[#allocation2 + $0x10] sm:$0xff]  ;;  %v23_v10 = vcombine.high %v21_v6, %v21_v6  ;;  %v90_v12 = vcombine.high %v88_v7, %v88_v7  ;;  %v222_v13 = vld [vmem:[#allocation2 + $0x18] sm:$0xff]  ;;  %s377_s0 = smov [#allocation5]  }
  0x14   :  { %v28_v3 = vshrl.u32 %v27_v0, 7  ;;  %v157_v15 = vcombine.high %v155_v8, %v155_v8  ;;  %v224_v17 = vcombine.high %v222_v13, %v222_v13  ;;  %s294_s18 = sshll.u32 %s377_s0, 4  ;;  %s295_s18 = int_to_ptr.vmem [resolvable:$true] %s294_s18 }
  0x15   :  { %v26_v4 = vunpack.c.0.s8 %v25_v2  ;;  %s349_s19 = scalar_lea.vmem %s295_s18, 512  ;;  %p354_p9 = scmp.lt.s32.totalorder %s295_s18, %s295_s18 }
  0x16   :  { %p350_p8 = scmp.ne.s32.totalorder %s295_s18, %s349_s19  ;;  %p355_p10 = scmp.lt.s32.totalorder %s349_s19, %s349_s19 }
  0x17   :  { %v402_v5 = vsub.s32 %v26_v4, %v28_v3 }
  0x18   :  { %p356_p11 = por %p355_p10, %p354_p9 }
  0x19   :  { %v30_v9 = vrot.slane %v21_v6, %v402_v5  ;;  %v97_v11 = vrot.slane %v88_v7, %v402_v5  ;;  %v164_v14 = vrot.slane %v155_v8, %v402_v5  ;;  %v231_v16 = vrot.slane %v222_v13, %v402_v5 }
  0x1a   :  { %v37_v20 = vrot.slane %v23_v10, %v402_v5  ;;  %v104_v23 = vrot.slane %v90_v12, %v402_v5  ;;  %v171_v43 = vrot.slane %v157_v15, %v402_v5  ;;  %v238_v48 = vrot.slane %v224_v17, %v402_v5  ;;  %p357_p12 = pnand %p356_p11, %p350_p8 }
  0x1b   :  { %306 = vst.sshfl [vmem:[#allocation5] sm:$0x1 pattern:$0x73625140] %v30_v9  ;;  %v38_v18 = vcombine.high %v30_v9, %v30_v9  ;;  %v46_v19 = vrot.slane %v30_v9, %v402_v5  ;;  %v105_v21 = vcombine.high %v97_v11, %v97_v11  ;;  %v113_v22 = vrot.slane %v97_v11, %v402_v5 }
  0x1c   :  { %310 = vst.sshfl [vmem:[#allocation5 + $0x1] sm:$0x1 pattern:$0x73625140] %v97_v11  ;;  %v172_v24 = vcombine.high %v164_v14, %v164_v14  ;;  %v180_v25 = vrot.slane %v164_v14, %v402_v5  ;;  %v39_v28 = vcombine.high %v37_v20, %v37_v20  ;;  %v53_v29 = vrot.slane %v37_v20, %v402_v5 }
  0x1d   :  { %314 = vst.sshfl [vmem:[#allocation5 + $0x2] sm:$0x1 pattern:$0x73625140] %v164_v14  ;;  %v68_v26 = vcombine.high %v46_v19, %v46_v19  ;;  %v60_v27 = vrot.slane %v38_v18, %v402_v5  ;;  %v135_v30 = vcombine.high %v113_v22, %v113_v22  ;;  %v127_v31 = vrot.slane %v105_v21, %v402_v5 }
  0x1e   :  { %318 = vst.sshfl [vmem:[#allocation5 + $0x3] sm:$0x1 pattern:$0x73625140] %v231_v16  ;;  %v106_v32 = vcombine.high %v104_v23, %v104_v23  ;;  %v120_v33 = vrot.slane %v104_v23, %v402_v5  ;;  %v69_v35 = vcombine.high %v53_v29, %v53_v29  ;;  %v67_v36 = vrot.slane %v39_v28, %v402_v5 }
  0x1f   :  { %307 = vst.sshfl [vmem:[#allocation5 + $0x4] sm:$0x1 pattern:$0x73625140] %v38_v18  ;;  %82 = vst [vmem:[#allocation5 + $0x8] sm:$0x1] %v68_v26  ;;  %v70_v34 = vcombine.high %v60_v27, %v60_v27  ;;  %v202_v37 = vcombine.high %v180_v25, %v180_v25  ;;  %v137_v38 = vcombine.high %v127_v31, %v127_v31 }
  0x20   :  { %308 = vst.sshfl [vmem:[#allocation5 + $0x10] sm:$0x1 pattern:$0x73625140] %v37_v20  ;;  %149 = vst [vmem:[#allocation5 + $0x9] sm:$0x1] %v135_v30  ;;  %v136_v39 = vcombine.high %v120_v33, %v120_v33  ;;  %v134_v40 = vrot.slane %v106_v32, %v402_v5  ;;  %v194_v41 = vrot.slane %v172_v24, %v402_v5 }
  0x21   :  { %311 = vst.sshfl [vmem:[#allocation5 + $0x5] sm:$0x1 pattern:$0x73625140] %v105_v21  ;;  %83 = vst [vmem:[#allocation5 + $0xc] sm:$0x1] %v70_v34  ;;  %v71_v42 = vcombine.high %v67_v36, %v67_v36  ;;  %v239_v44 = vcombine.high %v231_v16, %v231_v16  ;;  %v247_v45 = vrot.slane %v231_v16, %v402_v5 }
  0x22   :  { %312 = vst.sshfl [vmem:[#allocation5 + $0x11] sm:$0x1 pattern:$0x73625140] %v104_v23  ;;  %86 = vst [vmem:[#allocation5 + $0x18] sm:$0x1] %v69_v35  ;;  %v138_v46 = vcombine.high %v134_v40, %v134_v40  ;;  %v204_v47 = vcombine.high %v194_v41, %v194_v41  ;;  %v173_v49 = vcombine.high %v171_v43, %v171_v43 }
  0x23   :  { %315 = vst.sshfl [vmem:[#allocation5 + $0x6] sm:$0x1 pattern:$0x73625140] %v172_v24  ;;  %216 = vst [vmem:[#allocation5 + $0xa] sm:$0x1] %v202_v37  ;;  %v187_v50 = vrot.slane %v171_v43, %v402_v5  ;;  %v269_v51 = vcombine.high %v247_v45, %v247_v45  ;;  %v261_v52 = vrot.slane %v239_v44, %v402_v5 }
  0x24   :  { %309 = vst.sshfl [vmem:[#allocation5 + $0x14] sm:$0x1 pattern:$0x73625140] %v39_v28  ;;  %150 = vst [vmem:[#allocation5 + $0xd] sm:$0x1] %v137_v38  ;;  %v240_v53 = vcombine.high %v238_v48, %v238_v48  ;;  %v254_v54 = vrot.slane %v238_v48, %v402_v5  ;;  %v201_v56 = vrot.slane %v173_v49, %v402_v5 }
  0x25   :  { %313 = vst.sshfl [vmem:[#allocation5 + $0x15] sm:$0x1 pattern:$0x73625140] %v106_v32  ;;  %153 = vst [vmem:[#allocation5 + $0x19] sm:$0x1] %v136_v39  ;;  %v203_v55 = vcombine.high %v187_v50, %v187_v50  ;;  %v271_v57 = vcombine.high %v261_v52, %v261_v52 }
  0x26   :  { %87 = vst [vmem:[#allocation5 + $0x1c] sm:$0x1] %v71_v42  ;;  %316 = vst.sshfl [vmem:[#allocation5 + $0x12] sm:$0x1 pattern:$0x73625140] %v171_v43  ;;  %v270_v58 = vcombine.high %v254_v54, %v254_v54  ;;  %v268_v59 = vrot.slane %v240_v53, %v402_v5  ;;  %v205_v60 = vcombine.high %v201_v56, %v201_v56 }
  0x27   :  { %319 = vst.sshfl [vmem:[#allocation5 + $0x7] sm:$0x1 pattern:$0x73625140] %v239_v44  ;;  %154 = vst [vmem:[#allocation5 + $0x1d] sm:$0x1] %v138_v46 }
  0x28   :  { %217 = vst [vmem:[#allocation5 + $0xe] sm:$0x1] %v204_v47  ;;  %320 = vst.sshfl [vmem:[#allocation5 + $0x13] sm:$0x1 pattern:$0x73625140] %v238_v48  ;;  %v272_v61 = vcombine.high %v268_v59, %v268_v59 }
  0x29   :  { %317 = vst.sshfl [vmem:[#allocation5 + $0x16] sm:$0x1 pattern:$0x73625140] %v173_v49  ;;  %283 = vst [vmem:[#allocation5 + $0xb] sm:$0x1] %v269_v51 }
  0x2a   :  { %321 = vst.sshfl [vmem:[#allocation5 + $0x17] sm:$0x1 pattern:$0x73625140] %v240_v53  ;;  %220 = vst [vmem:[#allocation5 + $0x1a] sm:$0x1] %v203_v55 }
  0x2b   :  { %284 = vst [vmem:[#allocation5 + $0xf] sm:$0x1] %v271_v57  ;;  %287 = vst [vmem:[#allocation5 + $0x1b] sm:$0x1] %v270_v58 }
  0x2c   :  { %221 = vst [vmem:[#allocation5 + $0x1e] sm:$0x1] %v205_v60  ;;  %288 = vst [vmem:[#allocation5 + $0x1f] sm:$0x1] %v272_v61 }
  0x2d   :  { %360 = shalt.err (!%p357_p12)
}
  0x2e   :  { %s361_s22 = scalar_lea.hbm %s441_s1, 512 }
  0x2f   :  { %p362_p13 = scmp.ne.s32.totalorder %s441_s1, %s361_s22  ;;  %p365_p0 = scmp.lt.u32.totalorder %s361_s22, %s441_s1 }
  0x31   :  { %p367_p1 = pnand %p365_p0, %p362_p13 }
  0x33   :  { %370 = shalt.err (!%p367_p1)
}
  0x34   :  { %s378_s27 = smov 64   ;;  %s379_s28 = smov 4  }
  0x35   :  { %300 = dma.vmem_to_hbm [thread:$0]  %s295_s18, 512, %s441_s1, [#allocation4], %s378_s27, %s378_s27, %s379_s28  }
  0x36   :  { %373 = dma.done.wait [#allocation4], 512  }
  0x37   :  { %374 = vsyncadd [#allocation4], 4294966784 }
  0x38   :  { %304 = vsyncpa [#allocation3], 1 }
  0x39   :  { %305 = vsyncpa [#allocation4], 1 }

</bundles_post_ra>
